<compile_context>
chip_gen: v5e
topology: v5e:2x2
jax: 0.10.0
libtpu: 0.0.40
codegen_flags: <defaults>
</compile_context>

<pallas_src>
import numpy as np
import jax
import jax.numpy as jnp
from jax import lax
from jax.experimental import pallas as pl
from jax.experimental.pallas import tpu as pltpu

INPUT_DIM = 32     # feature dim of each patch
HIDDEN_DIM = 16    # attention MLP hidden dim
NUM_CLASSES = 4    # bag-level classes

_FEATURE_VMEM_BUDGET = 12 * 1024 * 1024   # bytes allowed for the double-buffered feature tile


def _round_up(x, m):
    return ((x + m - 1) // m) * m


def _mil_kernel(sizes_ref,   # VMEM (TB, 1, 1) int32  valid patches per bag
                feat_ref,    # VMEM (TB, P, D) f32    padded patches for TB bags
                wf_ref,      # VMEM (D, H+C)          fused [w1 | wc]
                bf_ref,      # VMEM (1, H+C)          fused [b1 | bc]
                w2_ref,      # VMEM (1, H)            attention projection (row vector)
                b2_ref,      # VMEM (1, 1)
                out_ref):    # VMEM (TB, C)           bag logits
    TB, P, D = feat_ref.shape
    H = w2_ref.shape[1]
    C = out_ref.shape[1]

    # ---- one fused matmul for the whole tile of bags (free reshape: P % 8 == 0) ----
    x = feat_ref[...].reshape(TB * P, D)                                   # (TB*P, D)
    fused = jnp.dot(x, wf_ref[...], preferred_element_type=jnp.float32) + bf_ref[...]
    h = jnp.tanh(fused[:, :H])                                             # (TB*P, H)  (EUP)
    patch_logits = fused[:, H:]                                            # (TB*P, C)

    # ---- attention logits: VPU multiply + lane (XLU) reduce, no width-1 MXU matmul ----
    a = jnp.sum(h * w2_ref[...], axis=-1, keepdims=True) + b2_ref[...]     # (TB*P, 1)
    a = a.reshape(TB, P, 1)                                                # free split

    # ---- masked per-bag softmax over the patch (sublane) axis ----
    n_valid = sizes_ref[...]                                               # (TB, 1, 1)
    idx = lax.broadcasted_iota(jnp.int32, (TB, P, 1), 1)
    valid = idx < n_valid                                                  # (TB, P, 1)
    a = jnp.where(valid, a, -1e30)
    a = a - jnp.max(a, axis=1, keepdims=True)
    e = jnp.where(valid, jnp.exp(a), 0.0)                                  # pads -> 0
    denom = jnp.sum(e, axis=1, keepdims=True)                              # (TB, 1, 1)
    # non-empty bags have denom >= 1; empty bags get denom 0 -> clamp -> attn == 0 -> logits == 0
    denom_safe = jnp.maximum(denom, 0.5)
    inv = pl.reciprocal(denom_safe, approx=True)                           # EUP slot
    inv = inv * (2.0 - denom_safe * inv)                                   # Newton step: f32 accuracy
    attn = e * inv                                                         # (TB, P, 1)

    # ---- additive attention-weighted pooling ----
    weighted = attn * patch_logits.reshape(TB, P, C)                       # (TB, P, C)
    out_ref[...] = jnp.sum(weighted, axis=1)                               # (TB, C)


def additive_mil_forward(features_flat, bag_sizes, params, *, bags_per_block=64):
    """features_flat: (#patches, D) f32; bag_sizes: (#bags,) int; params: (w1,b1,w2,b2,wc,bc)."""
    w1, b1, w2, b2, wc, bc = params
    D, H = w1.shape
    C = wc.shape[1]
    HC = H + C

    sizes_np = np.asarray(bag_sizes, dtype=np.int32)
    B = int(sizes_np.shape[0])
    P = _round_up(max(int(sizes_np.max()), 1), 8)            # sublane-aligned patches per bag

    # Bags per grid step: multiple of 8, capped so the double-buffered feature tile fits VMEM.
    bytes_per_bag = 2 * P * D * 4                             # 2 pipeline buffers, f32
    tb_vmem_cap = max(8, (_FEATURE_VMEM_BUDGET // bytes_per_bag) // 8 * 8)
    TB = min(_round_up(bags_per_block, 8), _round_up(B, 8), tb_vmem_cap)
    B_pad = _round_up(B, TB)

    # Host-side padding of flat ragged features into (B_pad, P, D).
    feats_np = np.asarray(features_flat, dtype=np.float32)
    padded = np.zeros((B_pad, P, D), dtype=np.float32)
    offs = np.concatenate([[0], np.cumsum(sizes_np)]).astype(np.int64)
    for i in range(B):
        n = int(sizes_np[i])
        padded[i, :n] = feats_np[offs[i]:offs[i] + n]
    sizes_pad = np.zeros((B_pad, 1, 1), dtype=np.int32)
    sizes_pad[:B, 0, 0] = sizes_np

    # Fuse pointer layer-1 and classifier head so x goes through the MXU once per block.
    wf = jnp.concatenate([w1, wc], axis=1)                    # (D, H+C)
    bf = jnp.concatenate([b1, bc], axis=1)                    # (1, H+C)
    w2_row = jnp.reshape(w2, (1, H))                          # (1, H) for VPU reduce
    b2_2d = jnp.reshape(b2, (1, 1))

    grid = (B_pad // TB,)
    grid_spec = pltpu.PrefetchScalarGridSpec(
        num_scalar_prefetch=0,
        grid=grid,
        in_specs=[
            pl.BlockSpec((TB, 1, 1), lambda i: (i, 0, 0)),    # bag sizes for this tile
            pl.BlockSpec((TB, P, D), lambda i: (i, 0, 0)),    # this tile's padded patches
            pl.BlockSpec((D, HC), lambda i: (0, 0)),          # weights: constant block -> no re-DMA
            pl.BlockSpec((1, HC), lambda i: (0, 0)),
            pl.BlockSpec((1, H), lambda i: (0, 0)),
            pl.BlockSpec((1, 1), lambda i: (0, 0)),
        ],
        out_specs=pl.BlockSpec((TB, C), lambda i: (i, 0)),
    )
    out = pl.pallas_call(
        _mil_kernel,
        out_shape=jax.ShapeDtypeStruct((B_pad, C), jnp.float32),
        grid_spec=grid_spec,
        compiler_params=pltpu.CompilerParams(
            dimension_semantics=("parallel",)),               # disjoint output blocks -> safe
    )(jnp.asarray(sizes_pad), jnp.asarray(padded), wf, bf, w2_row, b2_2d)
    return out[:B]                                            # (B, C)


def init_params(key):
    k1, k2, k3 = jax.random.split(key, 3)
    w1 = jax.random.normal(k1, (INPUT_DIM, HIDDEN_DIM), jnp.float32) * 0.1
    b1 = jnp.zeros((1, HIDDEN_DIM), jnp.float32)
    w2 = jax.random.normal(k2, (HIDDEN_DIM, 1), jnp.float32) * 0.1
    b2 = jnp.zeros((1, 1), jnp.float32)
    wc = jax.random.normal(k3, (INPUT_DIM, NUM_CLASSES), jnp.float32) * 0.1
    bc = jnp.zeros((1, NUM_CLASSES), jnp.float32)
    return (w1, b1, w2, b2, wc, bc)


def reference_forward(features_flat, bag_sizes, params):
    """Pure-numpy reference matching the PyTorch module semantics on flat features."""
    w1, b1, w2, b2, wc, bc = [np.asarray(p) for p in params]
    x_all = np.asarray(features_flat)
    offs = np.concatenate([[0], np.cumsum(np.asarray(bag_sizes))])
    out = []
    for i in range(len(bag_sizes)):
        x = x_all[offs[i]:offs[i + 1]]
        a = np.tanh(x @ w1 + b1) @ w2 + b2
        a = a - a.max()
        e = np.exp(a)
        attn = e / e.sum()
        patch_logits = x @ wc + bc
        out.append((attn * patch_logits).sum(axis=0))
    return np.stack(out)


if __name__ == "__main__":
    key = jax.random.PRNGKey(0)
    k_feat, k_param = jax.random.split(key)

    bag_sizes_np = np.array([8, 6, 11, 1], dtype=np.int32)         # (#bags,)
    total_patches = int(bag_sizes_np.sum())                         # 26
    features_flat = jax.random.normal(k_feat, (total_patches, INPUT_DIM), jnp.float32)

    params = init_params(k_param)

    logits = additive_mil_forward(features_flat, bag_sizes_np, params)
    logits = jax.block_until_ready(logits)

    ref = reference_forward(features_flat, bag_sizes_np, params)
    np.testing.assert_allclose(np.asarray(logits), ref, rtol=1e-3, atol=1e-4)

    print("KERNEL_OK")
</pallas_src>

<mosaic_0001>
module attributes {stable_mosaic.version = 11 : i64} {
  func.func @_mil_kernel(%arg0: i32, %arg1: memref<8x1x1xi32, #tpu.memory_space<vmem>>, %arg2: memref<8x16x32xf32, #tpu.memory_space<vmem>>, %arg3: memref<32x20xf32, #tpu.memory_space<vmem>>, %arg4: memref<1x20xf32, #tpu.memory_space<vmem>>, %arg5: memref<1x16xf32, #tpu.memory_space<vmem>>, %arg6: memref<1x1xf32, #tpu.memory_space<vmem>>, %arg7: memref<8x4xf32, #tpu.memory_space<vmem>>) attributes {dimension_semantics = [#tpu.dimension_semantics<parallel>], iteration_bounds = array<i64: 1>, scalar_prefetch = 0 : i64, scratch_operands = 0 : i64, tpu.core_type = #tpu.core_type<tc>, window_params = [{transform_indices = @transform_0, window_bounds = array<i64: 8, 1, 1>}, {transform_indices = @transform_1, window_bounds = array<i64: 8, 16, 32>}, {pipeline_mode = #tpu.pipeline_mode<synchronous>, transform_indices = @transform_2, window_bounds = array<i64: 32, 20>}, {pipeline_mode = #tpu.pipeline_mode<synchronous>, transform_indices = @transform_3, window_bounds = array<i64: 1, 20>}, {pipeline_mode = #tpu.pipeline_mode<synchronous>, transform_indices = @transform_4, window_bounds = array<i64: 1, 16>}, {pipeline_mode = #tpu.pipeline_mode<synchronous>, transform_indices = @transform_5, window_bounds = array<i64: 1, 1>}, {transform_indices = @transform_6, window_bounds = array<i64: 8, 4>}]} {
    %c0 = arith.constant 0 : index
    %c0_0 = arith.constant 0 : index
    %c0_1 = arith.constant 0 : index
    %0 = vector.load %arg2[%c0, %c0_0, %c0_1] : memref<8x16x32xf32, #tpu.memory_space<vmem>>, vector<8x16x32xf32>
    %1 = vector.shape_cast %0 : vector<8x16x32xf32> to vector<128x32xf32>
    %c0_2 = arith.constant 0 : index
    %c0_3 = arith.constant 0 : index
    %2 = vector.load %arg3[%c0_2, %c0_3] : memref<32x20xf32, #tpu.memory_space<vmem>>, vector<32x20xf32>
    %cst = arith.constant dense<0.000000e+00> : vector<128x20xf32>
    %3 = tpu.matmul %1, %2, %cst {dimension_numbers = #tpu.dot_dimension_numbers<[1], [0], [0], [1], [0, 0, 1, 1], [], []>} : vector<128x32xf32>, vector<32x20xf32>, vector<128x20xf32> -> vector<128x20xf32>
    %c0_4 = arith.constant 0 : index
    %c0_5 = arith.constant 0 : index
    %4 = vector.load %arg4[%c0_4, %c0_5] : memref<1x20xf32, #tpu.memory_space<vmem>>, vector<1x20xf32>
    %5 = vector.broadcast %4 : vector<1x20xf32> to vector<128x20xf32>
    %6 = arith.addf %3, %5 : vector<128x20xf32>
    %7 = vector.extract_strided_slice %6 {offsets = [0, 0], sizes = [128, 16], strides = [1, 1]} : vector<128x20xf32> to vector<128x16xf32>
    %8 = math.tanh %7 : vector<128x16xf32>
    %9 = vector.extract_strided_slice %6 {offsets = [0, 16], sizes = [128, 4], strides = [1, 1]} : vector<128x20xf32> to vector<128x4xf32>
    %c0_6 = arith.constant 0 : index
    %c0_7 = arith.constant 0 : index
    %10 = vector.load %arg5[%c0_6, %c0_7] : memref<1x16xf32, #tpu.memory_space<vmem>>, vector<1x16xf32>
    %11 = vector.broadcast %10 : vector<1x16xf32> to vector<128x16xf32>
    %12 = arith.mulf %8, %11 : vector<128x16xf32>
    %cst_8 = arith.constant dense<0.000000e+00> : vector<128xf32>
    %13 = vector.multi_reduction <add>, %12, %cst_8 [1] : vector<128x16xf32> to vector<128xf32>
    %14 = vector.shape_cast %13 : vector<128xf32> to vector<128x1xf32>
    %c0_9 = arith.constant 0 : index
    %c0_10 = arith.constant 0 : index
    %15 = vector.load %arg6[%c0_9, %c0_10] : memref<1x1xf32, #tpu.memory_space<vmem>>, vector<1x1xf32>
    %16 = vector.broadcast %15 : vector<1x1xf32> to vector<128x1xf32>
    %17 = arith.addf %14, %16 : vector<128x1xf32>
    %18 = vector.shape_cast %17 : vector<128x1xf32> to vector<8x16x1xf32>
    %c0_11 = arith.constant 0 : index
    %c0_12 = arith.constant 0 : index
    %c0_13 = arith.constant 0 : index
    %19 = vector.load %arg1[%c0_11, %c0_12, %c0_13] : memref<8x1x1xi32, #tpu.memory_space<vmem>>, vector<8x1x1xi32>
    %20 = tpu.iota {dimensions = array<i32: 1>} : vector<8x16x1xi32>
    %21 = vector.broadcast %19 : vector<8x1x1xi32> to vector<8x16x1xi32>
    %22 = arith.cmpi slt, %20, %21 : vector<8x16x1xi32>
    %cst_14 = arith.constant -1.000000e+30 : f32
    %23 = vector.broadcast %cst_14 : f32 to vector<8x16x1xf32>
    %24 = arith.select %22, %18, %23 : vector<8x16x1xi1>, vector<8x16x1xf32>
    %cst_15 = arith.constant dense<0xFF800000> : vector<8x1xf32>
    %25 = vector.multi_reduction <maximumf>, %24, %cst_15 [1] : vector<8x16x1xf32> to vector<8x1xf32>
    %26 = vector.shape_cast %25 : vector<8x1xf32> to vector<8x1x1xf32>
    %27 = vector.broadcast %26 : vector<8x1x1xf32> to vector<8x16x1xf32>
    %28 = arith.subf %24, %27 : vector<8x16x1xf32>
    %29 = math.exp %28 : vector<8x16x1xf32>
    %cst_16 = arith.constant 0.000000e+00 : f32
    %30 = vector.broadcast %cst_16 : f32 to vector<8x16x1xf32>
    %31 = arith.select %22, %29, %30 : vector<8x16x1xi1>, vector<8x16x1xf32>
    %cst_17 = arith.constant dense<0.000000e+00> : vector<8x1xf32>
    %32 = vector.multi_reduction <add>, %31, %cst_17 [1] : vector<8x16x1xf32> to vector<8x1xf32>
    %33 = vector.shape_cast %32 : vector<8x1xf32> to vector<8x1x1xf32>
    %cst_18 = arith.constant 5.000000e-01 : f32
    %34 = vector.broadcast %cst_18 : f32 to vector<8x1x1xf32>
    %35 = arith.maximumf %33, %34 : vector<8x1x1xf32>
    %36 = tpu.reciprocal %35 {approx = true} : vector<8x1x1xf32> -> vector<8x1x1xf32>
    %37 = arith.mulf %35, %36 : vector<8x1x1xf32>
    %cst_19 = arith.constant 2.000000e+00 : f32
    %38 = vector.broadcast %cst_19 : f32 to vector<8x1x1xf32>
    %39 = arith.subf %38, %37 : vector<8x1x1xf32>
    %40 = arith.mulf %36, %39 : vector<8x1x1xf32>
    %41 = vector.broadcast %40 : vector<8x1x1xf32> to vector<8x16x1xf32>
    %42 = arith.mulf %31, %41 : vector<8x16x1xf32>
    %43 = vector.shape_cast %9 : vector<128x4xf32> to vector<8x16x4xf32>
    %44 = vector.broadcast %42 : vector<8x16x1xf32> to vector<8x16x4xf32>
    %45 = arith.mulf %44, %43 : vector<8x16x4xf32>
    %cst_20 = arith.constant dense<0.000000e+00> : vector<8x4xf32>
    %46 = vector.multi_reduction <add>, %45, %cst_20 [1] : vector<8x16x4xf32> to vector<8x4xf32>
    %c0_21 = arith.constant 0 : index
    %c0_22 = arith.constant 0 : index
    %47 = vector.load %arg7[%c0_21, %c0_22] : memref<8x4xf32, #tpu.memory_space<vmem>>, vector<8x4xf32>
    tpu.vector_store %arg7[%c0_21, %c0_22], %46 {strides = array<i32>} : memref<8x4xf32, #tpu.memory_space<vmem>>, vector<8x4xf32>,
    return
  }
  func.func @transform_0(%arg0: i32) -> (i32, i32, i32) {
    %c0_i32 = arith.constant 0 : i32
    %c0_i32_0 = arith.constant 0 : i32
    %c0_i32_1 = arith.constant 0 : i32
    return %arg0, %c0_i32, %c0_i32_0 : i32, i32, i32
  }
  func.func @transform_1(%arg0: i32) -> (i32, i32, i32) {
    %c0_i32 = arith.constant 0 : i32
    %c0_i32_0 = arith.constant 0 : i32
    %c0_i32_1 = arith.constant 0 : i32
    return %arg0, %c0_i32, %c0_i32_0 : i32, i32, i32
  }
  func.func @transform_2(%arg0: i32) -> (i32, i32) {
    %c0_i32 = arith.constant 0 : i32
    %c0_i32_0 = arith.constant 0 : i32
    %c0_i32_1 = arith.constant 0 : i32
    return %c0_i32, %c0_i32_0 : i32, i32
  }
  func.func @transform_3(%arg0: i32) -> (i32, i32) {
    %c0_i32 = arith.constant 0 : i32
    %c0_i32_0 = arith.constant 0 : i32
    %c0_i32_1 = arith.constant 0 : i32
    return %c0_i32, %c0_i32_0 : i32, i32
  }
  func.func @transform_4(%arg0: i32) -> (i32, i32) {
    %c0_i32 = arith.constant 0 : i32
    %c0_i32_0 = arith.constant 0 : i32
    %c0_i32_1 = arith.constant 0 : i32
    return %c0_i32, %c0_i32_0 : i32, i32
  }
  func.func @transform_5(%arg0: i32) -> (i32, i32) {
    %c0_i32 = arith.constant 0 : i32
    %c0_i32_0 = arith.constant 0 : i32
    %c0_i32_1 = arith.constant 0 : i32
    return %c0_i32, %c0_i32_0 : i32, i32
  }
  func.func @transform_6(%arg0: i32) -> (i32, i32) {
    %c0_i32 = arith.constant 0 : i32
    %c0_i32_0 = arith.constant 0 : i32
    return %arg0, %c0_i32 : i32, i32
  }
}

</mosaic_0001>

<bundles_post_ra>
// kernel: tpu_custom_call.1
= control target key start
LH: loop header
LB: loop body
LE: loop exit
PB: predicated region body
PF: predicated region fallthrough
CT: control target
= control target key end

     0   :  { %s1526_s0 = inlined_call_operand.vmem [shape: s32[8,1,1], index: 0, kind: input, shape index: {}]   ;;  %s1527_s1 = inlined_call_operand.hbm [shape: f32[8,16,32], index: 1, kind: input, shape index: {}]   ;;  %s1528_s2 = inlined_call_operand.vmem [shape: f32[32,20], index: 2, kind: input, shape index: {}]   ;;  %s1529_s3 = inlined_call_operand.vmem [shape: f32[1,20], index: 3, kind: input, shape index: {}]   ;;  %s1530_s4 = inlined_call_operand.vmem [shape: f32[1,16], index: 4, kind: input, shape index: {}]   ;;  %s1531_s5 = inlined_call_operand.<no memory space> [shape: f32[1,1], index: 5, kind: input, shape index: {}]   ;;  %s1532_s6 = inlined_call_operand.vmem [shape: f32[8,4], index: 6, kind: output, shape index: {}]  }
   0x1   :  { %v11_v0 = vstv %s1531_s5 }
   0x2   :  { %12 = vst [vmem:[#allocation2] sm:$0x1] %v11_v0 }
   0x3   :  { %13 = vsyncpa [#allocation4], 0  ;;  %s20_s25 = sshll.u32 %s1527_s1, 4  ;;  %s954_s26 = smov [#allocation3]   ;;  %s21_s25 = int_to_ptr.hbm [resolvable:$true] %s20_s25 }
   0x4   :  { %s22_s27 = sshll.u32 %s954_s26, 4  ;;  %s955_s28 = smov 128   ;;  %s23_s27 = int_to_ptr.vmem [resolvable:$true] %s22_s27 }
   0x5   :  { %s956_s29 = smov 8  }
   0x6   :  { %28 = dma.hbm_to_vmem [thread:$0]  %s21_s25, 2048, %s23_s27, [#allocation4], %s955_s28, %s955_s28, %s956_s29  }
   0x7   :  { %952 = dma.done.wait [#allocation4], 2048  }
   0x8   :  { %953 = vsyncadd [#allocation4], 4294965248  ;;  %v60_v1 = vld [vmem:[%s1528_s2 + $0x18] sm:$0xff]  ;;  %v59_v2 = vld [vmem:[%s1528_s2 + $0x10] sm:$0xff]  ;;  %vm65_vm0 = vcmask 261120   ;;  %vm215_vm1 = vcmask 130048  }
   0x9   :  { %126 = vmatpush.msra.mxu0 %v60_v1  ;;  %817 = vmatpush.msra.mxu1 %v60_v1  ;;  %v58_v3 = vld [vmem:[%s1528_s2 + $0x8] sm:$0xff]  ;;  %v57_v4 = vld [vmem:[%s1528_s2] sm:$0xff]  ;;  %v43_v13 = vld [vmem:[#allocation3 + $0x10] sm:$0xff]  ;;  %vm335_vm6 = vcmask 7168  }
   0xa   :  { %818 = vmatpush.msra.mxu2 %v60_v1  ;;  %819 = vmatpush.msra.mxu3 %v60_v1  ;;  %v41_v5 = vld [vmem:[#allocation3] sm:$0xff]  ;;  %v42_v9 = vld [vmem:[#allocation3 + $0x8] sm:$0xff]  ;;  %v51_v14 = vld [vmem:[#allocation3 + $0x50] sm:$0xff] }
   0xb   :  { %127 = vmatpush.msra.mxu0 %v59_v2  ;;  %820 = vmatpush.msra.mxu1 %v59_v2  ;;  %v45_v6 = vld [vmem:[#allocation3 + $0x20] sm:$0xff]  ;;  %v50_v10 = vld [vmem:[#allocation3 + $0x48] sm:$0xff]  ;;  %v47_v15 = vld [vmem:[#allocation3 + $0x30] sm:$0xff] }
   0xc   :  { %821 = vmatpush.msra.mxu2 %v59_v2  ;;  %822 = vmatpush.msra.mxu3 %v59_v2  ;;  %v49_v7 = vld [vmem:[#allocation3 + $0x40] sm:$0xff]  ;;  %v46_v11 = vld [vmem:[#allocation3 + $0x28] sm:$0xff]  ;;  %v55_v16 = vld [vmem:[#allocation3 + $0x70] sm:$0xff] }
   0xd   :  { %128 = vmatpush.msra.mxu0 %v58_v3  ;;  %823 = vmatpush.msra.mxu1 %v58_v3  ;;  %v53_v8 = vld [vmem:[#allocation3 + $0x60] sm:$0xff]  ;;  %v54_v12 = vld [vmem:[#allocation3 + $0x68] sm:$0xff]  ;;  %v44_v17 = vld [vmem:[#allocation3 + $0x18] sm:$0xff] }
   0xe   :  { %824 = vmatpush.msra.mxu2 %v58_v3  ;;  %825 = vmatpush.msra.mxu3 %v58_v3  ;;  %v52_v18 = vld [vmem:[#allocation3 + $0x58] sm:$0xff] }
   0xf   :  { %129 = vmatpush.msra.mxu0 %v57_v4  ;;  %826 = vmatpush.msra.mxu1 %v57_v4  ;;  %v48_v19 = vld [vmem:[#allocation3 + $0x38] sm:$0xff] }
  0x10   :  { %827 = vmatpush.msra.mxu2 %v57_v4  ;;  %801 = vmatmul.msk.f32.vlgmr.msra.gmra.mxu0 %vm65_vm0, %v41_v5  ;;  %v56_v20 = vld [vmem:[#allocation3 + $0x78] sm:$0xff] }
  0x11   :  { %805 = vmatmul.msk.f32.vlgmr.msra.gmra.mxu1 %vm65_vm0, %v45_v6  ;;  %809 = vmatmul.msk.f32.vlgmr.msra.gmra.mxu2 %vm65_vm0, %v49_v7  ;;  %v1031_v21 = vld [vmem:[%s1529_s3] ss:$0 sm:$0xff] }
  0x12   :  { %828 = vmatpush.msra.mxu3 %v57_v4  ;;  %v1044_v26 = vld [vmem:[%s1530_s4] ss:$0 sm:$0xff] }
  0x13   :  { %813 = vmatmul.msk.f32.vlgmr.msra.gmra.mxu3 %vm65_vm0, %v53_v8 }
  0x18   :  { %802 = vmatmul.msk.f32.gmra.mxu0 %vm65_vm0, %v42_v9 }
  0x19   :  { %810 = vmatmul.msk.f32.gmra.mxu2 %vm65_vm0, %v50_v10  ;;  %806 = vmatmul.msk.f32.gmra.mxu1 %vm65_vm0, %v46_v11 }
  0x1b   :  { %814 = vmatmul.msk.f32.gmra.mxu3 %vm65_vm0, %v54_v12 }
  0x20   :  { %803 = vmatmul.msk.f32.gmra.mxu0 %vm65_vm0, %v43_v13 }
  0x21   :  { %811 = vmatmul.msk.f32.gmra.mxu2 %vm65_vm0, %v51_v14  ;;  %807 = vmatmul.msk.f32.gmra.mxu1 %vm65_vm0, %v47_v15 }
  0x23   :  { %815 = vmatmul.msk.f32.gmra.mxu3 %vm65_vm0, %v55_v16 }
  0x28   :  { %804 = vmatmul.msk.f32.gmra.mxu0 %vm65_vm0, %v44_v17 }
  0x29   :  { %812 = vmatmul.msk.f32.gmra.mxu2 %vm65_vm0, %v52_v18  ;;  %808 = vmatmul.msk.f32.gmra.mxu1 %vm65_vm0, %v48_v19 }
  0x2b   :  { %816 = vmatmul.msk.f32.gmra.mxu3 %vm65_vm0, %v56_v20 }
  0x8d   :  { %v131_v22 = vpop.f32.mrf.mxu0 }
  0x8e   :  { %v1034_v23 = vadd.f32 %v1031_v21, %v131_v22  ;;  %v143_v24 = vpop.f32.mrf.mxu1 }
  0x8f   :  { %v1037_v25 = vadd.f32 %v1031_v21, %v143_v24 }
  0x90   :  { %848 = vtanh.f32 %v1034_v23 }
  0x91   :  { %850 = vtanh.f32 %v1037_v25 }
  0x94   :  { %v155_v27 = vpop.f32.mrf.mxu2 }
  0x95   :  { %v1047_v28 = vadd.f32 %v1031_v21, %v155_v27  ;;  %v134_v29 = vpop.f32.mrf.mxu0 }
  0x96   :  { %v849_v30 = vpop.eup %848  ;;  %v167_v31 = vpop.f32.mrf.mxu3  ;;  %v1059_v38 = vadd.f32 %v1031_v21, %v134_v29 }
  0x97   :  { %v146_v32 = vpop.f32.mrf.mxu1  ;;  %v851_v33 = vpop.eup %850  ;;  %852 = vtanh.f32 %v1047_v28  ;;  %v1051_v34 = vadd.f32 %v1031_v21, %v167_v31  ;;  %v199_v35 = vmul.f32 %v849_v30, %v1044_v26 }
  0x98   :  { %v1055_v36 = vadd.f32 %v1031_v21, %v146_v32  ;;  %v203_v37 = vmul.f32 %v851_v33, %v1044_v26 }
  0x99   :  { %854 = vtanh.f32 %v1051_v34  ;;  %v216_v39 = vsel %vm215_vm1, %v199_v35, 0.0 }
  0x9a   :  { %v228_v40 = vsel %vm215_vm1, %v203_v37, 0.0  ;;  %217 = vadd.xlane.f32.xlu0 %v216_v39  ;;  %856 = vtanh.f32 %v1055_v36 }
  0x9b   :  { %229 = vadd.xlane.f32.xlu2 %v228_v40  ;;  %858 = vtanh.f32 %v1059_v38 }
  0x9c   :  { %v158_v41 = vpop.f32.mrf.mxu2 }
  0x9d   :  { %v853_v42 = vpop.eup %852  ;;  %v137_v43 = vpop.f32.mrf.mxu0  ;;  %v1074_v51 = vadd.f32 %v1031_v21, %v158_v41 }
  0x9e   :  { %v1067_v44 = vadd.f32 %v1031_v21, %v137_v43  ;;  %v207_v45 = vmul.f32 %v853_v42, %v1044_v26  ;;  %v170_v46 = vpop.f32.mrf.mxu3 }
  0x9f   :  { %v855_v47 = vpop.eup %854  ;;  %v149_v52 = vpop.f32.mrf.mxu1  ;;  %v1119_v24 = vadd.f32 %v1031_v21, %v170_v46 }
  0xa0   :  { %860 = vtanh.f32 %v1067_v44  ;;  %v240_v48 = vsel %vm215_vm1, %v207_v45, 0.0  ;;  %v211_v49 = vmul.f32 %v855_v47, %v1044_v26  ;;  %v857_v50 = vpop.eup %856  ;;  %v1089_v0 = vadd.f32 %v1031_v21, %v149_v52 }
  0xa1   :  { %v859_v54 = vpop.eup %858  ;;  %v204_v56 = vmul.f32 %v857_v50, %v1044_v26  ;;  %862 = vtanh.f32 %v1074_v51  ;;  %v1137_v50 = vld [vmem:[%s1526_s0 + $0x2] ss:$0 sm:$0xff] }
  0xa2   :  { %v252_v53 = vsel %vm215_vm1, %v211_v49, 0.0  ;;  %v200_v60 = vmul.f32 %v859_v54, %v1044_v26  ;;  %v292_v49 = vlaneseq  ;;  %v1139_v54 = vld [vmem:[#allocation2] ss:$0 sm:$0xff] }
  0xa3   :  { %241 = vadd.xlane.f32.xlu2 %v240_v48  ;;  %253 = vadd.xlane.f32.xlu0 %v252_v53  ;;  %v231_v1 = vsel %vm215_vm1, %v204_v56, 0.0 }
  0xa4   :  { %v161_v55 = vpop.f32.mrf.mxu2  ;;  %v219_v3 = vsel %vm215_vm1, %v200_v60, 0.0 }
  0xa5   :  { %v1080_v57 = vadd.f32 %v1031_v21, %v161_v55  ;;  %v140_v58 = vpop.f32.mrf.mxu0  ;;  %v1141_v55 = vshrl.u32 %v292_v49, 7 }
  0xa6   :  { %v861_v59 = vpop.eup %860  ;;  %v1084_v61 = vadd.f32 %v1031_v21, %v140_v58  ;;  %v173_v62 = vpop.f32.mrf.mxu3 }
  0xa7   :  { %864 = vtanh.f32 %v1080_v57  ;;  %v201_v63 = vmul.f32 %v861_v59, %v1044_v26  ;;  %v863_v4 = vpop.eup %862  ;;  %v152_v5 = vpop.f32.mrf.mxu1  ;;  %v1100_v9 = vadd.f32 %v1031_v21, %v173_v62  ;;  %vm307_vm2 = vcmp.lt.s32.totalorder %v1141_v55, %v1137_v50 }
  0xa8   :  { %866 = vtanh.f32 %v1084_v61  ;;  %v208_v11 = vmul.f32 %v863_v4, %v1044_v26  ;;  %v1105_v12 = vadd.f32 %v1031_v21, %v152_v5  ;;  %v1152_v58 = vadd.s32 8, %v1141_v55 }
  0xa9   :  { %v222_v2 = vsel %vm215_vm1, %v201_v63, 0.0  ;;  %868 = vtanh.f32 %v1089_v0  ;;  %1536 = vst [vmem:[#allocation6_spill] sm:$0xff] %v1100_v9 }
  0xaa   :  { %223 = vadd.xlane.f32.xlu1 %v222_v2  ;;  %v243_v18 = vsel %vm215_vm1, %v208_v11, 0.0  ;;  %vm308_vm4 = vcmp.lt.s32.totalorder %v1152_v58, %v1137_v50 }
  0xab   :  { %232 = vadd.xlane.f32.xlu2 %v231_v1  ;;  %220 = vadd.xlane.f32.xlu0 %v219_v3 }
  0xac   :  { %v164_v6 = vpop.f32.mrf.mxu2 }
  0xad   :  { %v865_v7 = vpop.eup %864  ;;  %v1097_v8 = vadd.f32 %v1031_v21, %v164_v6  ;;  %v1178_v6 = vld [vmem:[%s1526_s0 + $0x4] ss:$0 sm:$0xff] }
  0xae   :  { %v209_v10 = vmul.f32 %v865_v7, %v1044_v26  ;;  %v176_v13 = vpop.f32.mrf.mxu3  ;;  %v867_v15 = vpop.eup %866  ;;  %vm311_vm7 = vcmp.lt.s32.totalorder %v1141_v55, %v1178_v6  ;;  %vm312_vm8 = vcmp.lt.s32.totalorder %v1152_v58, %v1178_v6 }
  0xaf   :  { %870 = vtanh.f32 %v1097_v8  ;;  %v1109_v14 = vadd.f32 %v1031_v21, %v176_v13  ;;  %v869_v17 = vpop.eup %868  ;;  %v202_v19 = vmul.f32 %v867_v15, %v1044_v26 }
  0xb0   :  { %v246_v16 = vsel %vm215_vm1, %v209_v10, 0.0  ;;  %872 = vtanh.f32 %v1100_v9  ;;  %v205_v20 = vmul.f32 %v869_v17, %v1044_v26 }
  0xb1   :  { %1537 = vst [vmem:[#allocation7_spill] sm:$0xff] %v1109_v14  ;;  %874 = vtanh.f32 %v1105_v12  ;;  %v225_v30 = vsel %vm215_vm1, %v202_v19, 0.0  ;;  %v1202_v19 = vld [vmem:[%s1526_s0 + $0x6] ss:$0 sm:$0xff] }
  0xb2   :  { %247 = vadd.xlane.f32.xlu1 %v246_v16  ;;  %876 = vtanh.f32 %v1109_v14  ;;  %v234_v33 = vsel %vm215_vm1, %v205_v20, 0.0  ;;  %vm1533_vm9 = vcmp.lt.s32.totalorder %v1141_v55, %v1202_v19 }
  0xb3   :  { %244 = vadd.xlane.f32.xlu0 %v243_v18  ;;  %878 = vtanh.f32 %v1119_v24 }
  0xb5   :  { %v871_v22 = vpop.eup %870 }
  0xb6   :  { %v210_v27 = vmul.f32 %v871_v22, %v1044_v26  ;;  %v873_v29 = vpop.eup %872 }
  0xb7   :  { %v875_v31 = vpop.eup %874  ;;  %v213_v37 = vmul.f32 %v873_v29, %v1044_v26 }
  0xb8   :  { %v249_v32 = vsel %vm215_vm1, %v210_v27, 0.0  ;;  %v877_v35 = vpop.eup %876  ;;  %v206_v21 = vmul.f32 %v875_v31, %v1044_v26  ;;  %v1207_v27 = vld [vmem:[%s1526_s0 + $0x5] ss:$0 sm:$0xff] }
  0xb9   :  { %250 = vadd.xlane.f32.xlu2 %v249_v32  ;;  %v214_v39 = vmul.f32 %v877_v35, %v1044_v26  ;;  %v258_v40 = vsel %vm215_vm1, %v213_v37, 0.0  ;;  %v879_v42 = vpop.eup %878  ;;  %vm313_vm10 = vcmp.lt.s32.totalorder %v1141_v55, %v1207_v27  ;;  %vm314_vm12 = vcmp.lt.s32.totalorder %v1152_v58, %v1207_v27 }
  0xba   :  { %226 = vadd.xlane.f32.xlu1 %v225_v30  ;;  %v237_v41 = vsel %vm215_vm1, %v206_v21, 0.0  ;;  %v212_v45 = vmul.f32 %v879_v42, %v1044_v26  ;;  %v1146_v26 = vld [vmem:[%s1526_s0] ss:$0 sm:$0xff]  ;;  %v1212_v30 = vld [vmem:[%s1526_s0 + $0x1] ss:$0 sm:$0xff] }
  0xbb   :  { %235 = vadd.xlane.f32.xlu0 %v234_v33  ;;  %v261_v43 = vsel %vm215_vm1, %v214_v39, 0.0  ;;  %vm303_vm3 = vcmp.lt.s32.totalorder %v1141_v55, %v1146_v26  ;;  %vm304_vm5 = vcmp.lt.s32.totalorder %v1152_v58, %v1146_v26  ;;  %vm305_vm11 = vcmp.lt.s32.totalorder %v1141_v55, %v1212_v30 }
  0xbc   :  { %v255_v46 = vsel %vm215_vm1, %v212_v45, 0.0  ;;  %vm306_vm13 = vcmp.lt.s32.totalorder %v1152_v58, %v1212_v30 }
  0xc1   :  { %259 = vadd.xlane.f32.xlu2 %v258_v40  ;;  %v1229_v40 = vld [vmem:[%s1526_s0 + $0x3] ss:$0 sm:$0xff] }
  0xc2   :  { %238 = vadd.xlane.f32.xlu1 %v237_v41  ;;  %vm309_vm14 = vcmp.lt.s32.totalorder %v1141_v55, %v1229_v40  ;;  %vm310_vm0 = vcmp.lt.s32.totalorder %v1152_v58, %v1229_v40 }
  0xc3   :  { %262 = vadd.xlane.f32.xlu0 %v261_v43 }
  0xca   :  { %256 = vadd.xlane.f32.xlu1 %v255_v46 }
 0x10d   :  { %v218_v47 = vpop.xlane.xlu0 %217 }
 0x10e   :  { %v230_v48 = vpop.xlane.xlu2 %229  ;;  %v268_v59 = vadd.f32 %v1139_v54, %v218_v47 }
 0x10f   :  { %v272_v56 = vadd.f32 %v1139_v54, %v230_v48  ;;  %v1248_v48 = vld [vmem:[%s1526_s0 + $0x7] ss:$0 sm:$0xff]  ;;  %s958_s0 = smov 112  }
 0x110   :  { %v1169_v2 = vsel %vm303_vm3, %v268_v59, -1e+30  ;;  %vm317_vm15 = vcmp.lt.s32.totalorder %v1141_v55, %v1248_v48  ;;  %vm318_vm1 = vcmp.lt.s32.totalorder %v1152_v58, %v1248_v48 }
 0x111   :  { %v1160_v60 = vsel %vm307_vm2, %v272_v56, -1e+30  ;;  %v336_v11 = vsel %vm335_vm6, %v1169_v2, -inf }
 0x112   :  { %v354_v5 = vsel %vm335_vm6, %v1160_v60, -inf }
 0x116   :  { %v242_v52 = vpop.xlane.xlu2 %241  ;;  %v254_v53 = vpop.xlane.xlu0 %253 }
 0x117   :  { %v276_v16 = vadd.f32 %v1139_v54, %v242_v52  ;;  %v280_v21 = vadd.f32 %v1139_v54, %v254_v53 }
 0x119   :  { %v1219_v32 = vsel %vm311_vm7, %v276_v16, -1e+30  ;;  %v1255_v56 = vsel %vm1533_vm9, %v280_v21, -1e+30  ;;  %vm316_vm9 = vcmp.lt.s32.totalorder %v1152_v58, %v1202_v19 }
 0x11a   :  { %v372_v45 = vsel %vm335_vm6, %v1219_v32, -inf }
 0x11d   :  { %v224_v62 = vpop.xlane.xlu1 %223 }
 0x11e   :  { %v233_v63 = vpop.xlane.xlu2 %232  ;;  %v221_v1 = vpop.xlane.xlu0 %220  ;;  %v270_v46 = vadd.f32 %v1139_v54, %v224_v62 }
 0x11f   :  { %v273_v3 = vadd.f32 %v1139_v54, %v233_v63  ;;  %v269_v4 = vadd.f32 %v1139_v54, %v221_v1 }
 0x121   :  { %v1183_v7 = vsel %vm308_vm4, %v273_v3, -1e+30  ;;  %v1188_v10 = vsel %vm304_vm5, %v269_v4, -1e+30 }
 0x122   :  { %v355_v13 = vsel %vm335_vm6, %v1183_v7, -inf  ;;  %v337_v15 = vsel %vm335_vm6, %v1188_v10, -inf }
 0x123   :  { %v356_v17 = vmax.f32 %v354_v5, %v355_v13  ;;  %v338_v18 = vmax.f32 %v336_v11, %v337_v15  ;;  %v1270_v11 = vsel %vm305_vm11, %v270_v46, -1e+30 }
 0x125   :  { %v357_v20 = vrot.slane %v356_v17, 4  ;;  %v339_v22 = vrot.slane %v338_v18, 4  ;;  %v248_v29 = vpop.xlane.xlu1 %247 }
 0x126   :  { %v245_v31 = vpop.xlane.xlu0 %244  ;;  %v278_v39 = vadd.f32 %v1139_v54, %v248_v29 }
 0x127   :  { %v358_v33 = vmax.f32 %v356_v17, %v357_v20  ;;  %v340_v35 = vmax.f32 %v338_v18, %v339_v22  ;;  %v277_v37 = vadd.f32 %v1139_v54, %v245_v31 }
 0x128   :  { %v1260_v59 = vsel %vm313_vm10, %v278_v39, -1e+30 }
 0x129   :  { %v359_v41 = vrot.slane %v358_v33, 2  ;;  %v341_v42 = vrot.slane %v340_v35, 2  ;;  %v1236_v43 = vsel %vm312_vm8, %v277_v37, -1e+30  ;;  %v381_v22 = vsel %vm335_vm6, %v1260_v59, -inf }
 0x12a   :  { %v373_v47 = vsel %vm335_vm6, %v1236_v43, -inf }
 0x12b   :  { %v360_v49 = vmax.f32 %v358_v33, %v359_v41  ;;  %v342_v52 = vmax.f32 %v340_v35, %v341_v42  ;;  %v374_v53 = vmax.f32 %v372_v45, %v373_v47  ;;  %v345_v41 = vsel %vm335_vm6, %v1270_v11, -inf }
 0x12c   :  { %v251_v62 = vpop.xlane.xlu2 %250 }
 0x12d   :  { %v361_v63 = vrot.slane %v360_v49, 1  ;;  %v343_v1 = vrot.slane %v342_v52, 1  ;;  %v375_v3 = vrot.slane %v374_v53, 4  ;;  %v279_v4 = vadd.f32 %v1139_v54, %v251_v62  ;;  %v227_v5 = vpop.xlane.xlu1 %226 }
 0x12e   :  { %v271_v13 = vadd.f32 %v1139_v54, %v227_v5  ;;  %v236_v15 = vpop.xlane.xlu0 %235 }
 0x12f   :  { %v362_v16 = vmax.f32 %v360_v49, %v361_v63  ;;  %v344_v17 = vmax.f32 %v342_v52, %v343_v1  ;;  %v376_v18 = vmax.f32 %v374_v53, %v375_v3  ;;  %v1280_v20 = vsel %vm314_vm12, %v279_v4, -1e+30 }
 0x130   :  { %v382_v29 = vsel %vm335_vm6, %v1280_v20, -inf  ;;  %v1289_v31 = vsel %vm306_vm13, %v271_v13, -1e+30  ;;  %v274_v33 = vadd.f32 %v1139_v54, %v236_v15 }
 0x131   :  { %v412_v35 = vsub.f32 %v1160_v60, %v362_v16  ;;  %v413_v37 = vsub.f32 %v1183_v7, %v362_v16  ;;  %v408_v21 = vsub.f32 %v1169_v2, %v344_v17  ;;  %v409_v39 = vsub.f32 %v1188_v10, %v344_v17 }
 0x132   :  { %v377_v42 = vrot.slane %v376_v18, 2  ;;  %v383_v45 = vmax.f32 %v381_v22, %v382_v29  ;;  %v346_v46 = vsel %vm335_vm6, %v1289_v31, -inf  ;;  %v1305_v10 = vsel %vm309_vm14, %v274_v33, -1e+30 }
 0x133   :  { %v432_v47 = vmul.f32 1.442695, %v412_v35  ;;  %v434_v49 = vmul.f32 1.442695, %v413_v37  ;;  %v424_v52 = vmul.f32 1.442695, %v408_v21  ;;  %v347_v53 = vmax.f32 %v345_v41, %v346_v46 }
 0x134   :  { %v426_v62 = vmul.f32 1.442695, %v409_v39  ;;  %v378_v60 = vmax.f32 %v376_v18, %v377_v42  ;;  %v384_v63 = vrot.slane %v383_v45, 4  ;;  %v260_v7 = vpop.xlane.xlu2 %259  ;;  %v1311_v16 = vsel %vm335_vm6, %v1255_v56, -inf }
 0x135   :  { %880 = vpow2.f32 %v432_v47  ;;  %v348_v2 = vrot.slane %v347_v53, 4  ;;  %v282_v1 = vadd.f32 %v1139_v54, %v260_v7  ;;  %v239_v3 = vpop.xlane.xlu1 %238  ;;  %v363_v37 = vsel %vm335_vm6, %v1305_v10, -inf }
 0x136   :  { %882 = vpow2.f32 %v434_v49  ;;  %v379_v4 = vrot.slane %v378_v60, 1  ;;  %v385_v5 = vmax.f32 %v383_v45, %v384_v63  ;;  %v275_v13 = vadd.f32 %v1139_v54, %v239_v3  ;;  %v263_v15 = vpop.xlane.xlu0 %262 }
 0x137   :  { %884 = vpow2.f32 %v424_v52  ;;  %v349_v17 = vmax.f32 %v347_v53, %v348_v2  ;;  %v283_v18 = vadd.f32 %v1139_v54, %v263_v15  ;;  %v1317_v33 = vsel %vm317_vm15, %v282_v1, -1e+30 }
 0x138   :  { %886 = vpow2.f32 %v426_v62  ;;  %v380_v22 = vmax.f32 %v378_v60, %v379_v4  ;;  %v386_v29 = vrot.slane %v385_v5, 2  ;;  %v1324_v21 = vsel %vm310_vm0, %v275_v13, -1e+30 }
 0x139   :  { %v350_v35 = vrot.slane %v349_v17, 2  ;;  %v1329_v39 = vsel %vm318_vm1, %v283_v18, -1e+30  ;;  %v364_v46 = vsel %vm335_vm6, %v1324_v21, -inf  ;;  %v399_v52 = vsel %vm335_vm6, %v1317_v33, -inf }
 0x13a   :  { %v416_v41 = vsub.f32 %v1219_v32, %v380_v22  ;;  %v417_v42 = vsub.f32 %v1236_v43, %v380_v22  ;;  %v387_v45 = vmax.f32 %v385_v5, %v386_v29  ;;  %v365_v53 = vmax.f32 %v363_v37, %v364_v46 }
 0x13b   :  { %v881_v47 = vpop.eup %880  ;;  %v351_v49 = vmax.f32 %v349_v17, %v350_v35  ;;  %v400_v62 = vsel %vm335_vm6, %v1329_v39, -inf }
 0x13c   :  { %v883_v60 = vpop.eup %882  ;;  %v1342_v32 = vsel %vm307_vm2, %v881_v47, 0.0  ;;  %v440_v43 = vmul.f32 1.442695, %v416_v41  ;;  %v442_v63 = vmul.f32 1.442695, %v417_v42  ;;  %v388_v7 = vrot.slane %v387_v45, 1 }
 0x13d   :  { %v885_v2 = vpop.eup %884  ;;  %v1347_v1 = vsel %vm308_vm4, %v883_v60, 0.0  ;;  %v490_v3 = vsel %vm335_vm6, %v1342_v32, 0.0  ;;  %v352_v4 = vrot.slane %v351_v49, 1  ;;  %v366_v5 = vrot.slane %v365_v53, 4 }
 0x13e   :  { %v887_v13 = vpop.eup %886  ;;  %v491_v15 = vsel %vm335_vm6, %v1347_v1, 0.0  ;;  %v1358_v17 = vsel %vm303_vm3, %v885_v2, 0.0  ;;  %888 = vpow2.f32 %v440_v43  ;;  %v389_v50 = vmax.f32 %v387_v45, %v388_v7  ;;  %v257_v43 = vpop.xlane.xlu1 %256 }
 0x13f   :  { %v492_v18 = vadd.f32 %v491_v15, %v490_v3  ;;  %v1363_v22 = vsel %vm304_vm5, %v887_v13, 0.0  ;;  %v472_v29 = vsel %vm335_vm6, %v1358_v17, 0.0  ;;  %890 = vpow2.f32 %v442_v63 }
 0x140   :  { %v473_v35 = vsel %vm335_vm6, %v1363_v22, 0.0  ;;  %v418_v37 = vsub.f32 %v1260_v59, %v389_v50  ;;  %v419_v41 = vsub.f32 %v1280_v20, %v389_v50  ;;  %v353_v42 = vmax.f32 %v351_v49, %v352_v4 }
 0x141   :  { %v493_v46 = vrot.slane %v492_v18, 4  ;;  %v474_v45 = vadd.f32 %v473_v35, %v472_v29  ;;  %v367_v47 = vmax.f32 %v365_v53, %v366_v5  ;;  %v401_v60 = vmax.f32 %v399_v52, %v400_v62 }
 0x142   :  { %v444_v26 = vmul.f32 1.442695, %v418_v37  ;;  %v446_v7 = vmul.f32 1.442695, %v419_v41  ;;  %v410_v2 = vsub.f32 %v1270_v11, %v353_v42  ;;  %v411_v3 = vsub.f32 %v1289_v31, %v353_v42 }
 0x143   :  { %v494_v63 = vadd.f32 %v493_v46, %v492_v18  ;;  %v475_v13 = vrot.slane %v474_v45, 4  ;;  %v368_v15 = vrot.slane %v367_v47, 2  ;;  %v402_v14 = vrot.slane %v401_v60, 4 }
 0x144   :  { %v889_v9 = vpop.eup %888  ;;  %892 = vpow2.f32 %v444_v26  ;;  %v428_v59 = vmul.f32 1.442695, %v410_v2  ;;  %v430_v20 = vmul.f32 1.442695, %v411_v3  ;;  %v281_v49 = vadd.f32 %v1139_v54, %v257_v43 }
 0x145   :  { %v891_v4 = vpop.eup %890  ;;  %v495_v53 = vrot.slane %v494_v63, 2  ;;  %v476_v52 = vadd.f32 %v475_v13, %v474_v45  ;;  %v1377_v62 = vsel %vm311_vm7, %v889_v9, 0.0  ;;  %894 = vpow2.f32 %v446_v7 }
 0x146   :  { %v1382_v11 = vsel %vm312_vm8, %v891_v4, 0.0  ;;  %v508_v31 = vsel %vm335_vm6, %v1377_v62, 0.0  ;;  %896 = vpow2.f32 %v428_v59  ;;  %v369_v5 = vmax.f32 %v367_v47, %v368_v15 }
 0x147   :  { %v496_v54 = vadd.f32 %v495_v53, %v494_v63  ;;  %v477_v50 = vrot.slane %v476_v52, 2  ;;  %v509_v18 = vsel %vm335_vm6, %v1382_v11, 0.0  ;;  %898 = vpow2.f32 %v430_v20 }
 0x148   :  { %v510_v29 = vadd.f32 %v509_v18, %v508_v31  ;;  %v370_v9 = vrot.slane %v369_v5, 1  ;;  %v403_v35 = vmax.f32 %v401_v60, %v402_v14  ;;  %v1391_v6 = vsel %vm316_vm9, %v281_v49, -1e+30 }
 0x149   :  { %v497_v37 = vrot.slane %v496_v54, 1  ;;  %v478_v41 = vadd.f32 %v477_v50, %v476_v52  ;;  %v391_v42 = vsel %vm335_vm6, %v1391_v6, -inf  ;;  %v957_v7 = vmov 0  }
 0x14a   :  { %v893_v46 = vpop.eup %892  ;;  %v511_v45 = vrot.slane %v510_v29, 4  ;;  %v371_v47 = vmax.f32 %v369_v5, %v370_v9  ;;  %v404_v43 = vrot.slane %v403_v35, 2  ;;  %v392_v26 = vmax.f32 %v1311_v16, %v391_v42  ;;  %835 = vset.pattern.permute.xlu2 %v957_v7  ;;  %834 = vset.pattern.permute.xlu1 %v957_v7 }
 0x14b   :  { %v895_v14 = vpop.eup %894  ;;  %v479_v60 = vrot.slane %v478_v41, 1  ;;  %836 = vset.pattern.permute.xlu0 %v957_v7  ;;  %v1396_v2 = vadd.f32 %v497_v37, %v496_v54  ;;  %v1401_v3 = vsel %vm313_vm10, %v893_v46, 0.0  ;;  %vm1538_vm2 = vcmp.lt.s32.totalorder %v1141_v55, %v1202_v19 }
 0x14c   :  { %v897_v63 = vpop.eup %896  ;;  %v512_v13 = vadd.f32 %v511_v45, %v510_v29  ;;  %v1406_v15 = vsel %vm314_vm12, %v895_v14, 0.0  ;;  %v414_v16 = vsub.f32 %v1305_v10, %v371_v47  ;;  %v415_v59 = vsub.f32 %v1324_v21, %v371_v47 }
 0x14d   :  { %v899_v20 = vpop.eup %898  ;;  %v518_v49 = vsel %vm335_vm6, %v1406_v15, 0.0  ;;  %v1415_v4 = vsel %vm305_vm11, %v897_v63, 0.0  ;;  %v405_v53 = vmax.f32 %v403_v35, %v404_v43  ;;  %v393_v52 = vrot.slane %v392_v26, 4 }
 0x14e   :  { %v513_v31 = vrot.slane %v512_v13, 2  ;;  %v1420_v27 = vsel %vm306_vm13, %v899_v20, 0.0  ;;  %v481_v10 = vsel %vm335_vm6, %v1415_v4, 0.0  ;;  %v436_v21 = vmul.f32 1.442695, %v414_v16 }
 0x14f   :  { %v482_v5 = vsel %vm335_vm6, %v1420_v27, 0.0  ;;  %v438_v54 = vmul.f32 1.442695, %v415_v59  ;;  %v406_v50 = vrot.slane %v405_v53, 1  ;;  %v394_v18 = vmax.f32 %v392_v26, %v393_v52 }
 0x150   :  { %v514_v29 = vadd.f32 %v513_v31, %v512_v13  ;;  %v483_v9 = vadd.f32 %v482_v5, %v481_v10  ;;  %900 = vpow2.f32 %v436_v21  ;;  %v480_v35 = vadd.f32 %v479_v60, %v478_v41 }
 0x151   :  { %902 = vpow2.f32 %v438_v54  ;;  %v407_v37 = vmax.f32 %v405_v53, %v406_v50  ;;  %v395_v42 = vrot.slane %v394_v18, 2  ;;  %v546_v30 = vmax.f32 %v1396_v2, 0.5 }
 0x152   :  { %v515_v46 = vrot.slane %v514_v29, 1  ;;  %v484_v45 = vrot.slane %v483_v9, 4  ;;  %v544_v47 = vmax.f32 %v480_v35, 0.5  ;;  %v517_v43 = vsel %vm335_vm6, %v1401_v3, 0.0 }
 0x153   :  { %v422_v7 = vsub.f32 %v1317_v33, %v407_v37  ;;  %v423_v14 = vsub.f32 %v1329_v39, %v407_v37  ;;  %v396_v26 = vmax.f32 %v394_v18, %v395_v42  ;;  %904 = vrcp.f32 %v546_v30 }
 0x154   :  { %v485_v63 = vadd.f32 %v484_v45, %v483_v9  ;;  %906 = vrcp.f32 %v544_v47  ;;  %v516_v41 = vadd.f32 %v515_v46, %v514_v29  ;;  %v519_v60 = vadd.f32 %v518_v49, %v517_v43 }
 0x155   :  { %v452_v13 = vmul.f32 1.442695, %v422_v7  ;;  %v454_v16 = vmul.f32 1.442695, %v423_v14  ;;  %v397_v59 = vrot.slane %v396_v26, 1  ;;  %vm696_vm3 = vcmask 162944  }
 0x156   :  { %v901_v2 = vpop.eup %900  ;;  %v486_v20 = vrot.slane %v485_v63, 2  ;;  %v548_v53 = vmax.f32 %v516_v41, 0.5  ;;  %v520_v52 = vrot.slane %v519_v60, 4  ;;  %vm777_vm4 = vcmask 1041409  }
 0x157   :  { %v903_v31 = vpop.eup %902  ;;  %v1434_v33 = vsel %vm309_vm14, %v901_v2, 0.0  ;;  %908 = vpow2.f32 %v452_v13  ;;  %v398_v39 = vmax.f32 %v396_v26, %v397_v59  ;;  %vm779_vm5 = vcmask 1042434  }
 0x158   :  { %v487_v10 = vadd.f32 %v486_v20, %v485_v63  ;;  %v1439_v49 = vsel %vm310_vm0, %v903_v31, 0.0  ;;  %v499_v21 = vsel %vm335_vm6, %v1434_v33, 0.0  ;;  %910 = vpow2.f32 %v454_v16 }
 0x159   :  { %v905_v5 = vpop.eup %904  ;;  %v500_v54 = vsel %vm335_vm6, %v1439_v49, 0.0  ;;  %v420_v50 = vsub.f32 %v1255_v56, %v398_v39  ;;  %v421_v18 = vsub.f32 %v1391_v6, %v398_v39  ;;  %912 = vrcp.f32 %v548_v53 }
 0x15a   :  { %v907_v29 = vpop.eup %906  ;;  %v488_v9 = vrot.slane %v487_v10, 1  ;;  %v501_v35 = vadd.f32 %v500_v54, %v499_v21  ;;  %v521_v37 = vadd.f32 %v520_v52, %v519_v60  ;;  %v562_v43 = vmul.f32 %v905_v5, %v546_v30 }
 0x15b   :  { %v448_v40 = vmul.f32 1.442695, %v420_v50  ;;  %v450_v42 = vmul.f32 1.442695, %v421_v18  ;;  %v560_v46 = vmul.f32 %v907_v29, %v544_v47  ;;  %vm783_vm7 = vcmask 1044484  }
 0x15c   :  { %v502_v45 = vrot.slane %v501_v35, 4  ;;  %v489_v7 = vadd.f32 %v488_v9, %v487_v10  ;;  %v522_v14 = vrot.slane %v521_v37, 2  ;;  %v570_v20 = vsub.f32 2.0, %v562_v43 }
 0x15d   :  { %v909_v26 = vpop.eup %908  ;;  %914 = vpow2.f32 %v448_v40  ;;  %v568_v63 = vsub.f32 2.0, %v560_v46  ;;  %vm785_vm8 = vcmask 1045509   ;;  %vm789_vm10 = vcmask 1047559  }
 0x15e   :  { %v911_v41 = vpop.eup %910  ;;  %v503_v13 = vadd.f32 %v502_v45, %v501_v35  ;;  %916 = vpow2.f32 %v450_v42  ;;  %v545_v56 = vmax.f32 %v489_v7, 0.5  ;;  %v523_v59 = vadd.f32 %v522_v14, %v521_v37 }
 0x15f   :  { %v913_v6 = vpop.eup %912  ;;  %v1450_v16 = vsel %vm318_vm1, %v911_v41, 0.0  ;;  %v576_v60 = vmul.f32 %v907_v29, %v568_v63  ;;  %v1455_v30 = vsel %vm317_vm15, %v909_v26, 0.0  ;;  %v578_v35 = vmul.f32 %v905_v5, %v570_v20 }
 0x160   :  { %v504_v47 = vrot.slane %v503_v13, 2  ;;  %v536_v2 = vsel %vm335_vm6, %v1450_v16, 0.0  ;;  %v564_v39 = vmul.f32 %v913_v6, %v548_v53  ;;  %918 = vrcp.f32 %v545_v56 }
 0x161   :  { %v585_v52 = vmul.f32 %v576_v60, %v1363_v22  ;;  %v584_v31 = vmul.f32 %v576_v60, %v1358_v17  ;;  %v524_v21 = vrot.slane %v523_v59, 1  ;;  %v535_v54 = vsel %vm335_vm6, %v1455_v30, 0.0 }
 0x162   :  { %v505_v10 = vadd.f32 %v504_v47, %v503_v13  ;;  %v572_v48 = vsub.f32 2.0, %v564_v39  ;;  %v537_v18 = vadd.f32 %v536_v2, %v535_v54  ;;  %v589_v58 = vmul.f32 %v578_v35, %v1347_v1 }
 0x163   :  { %v915_v50 = vpop.eup %914  ;;  %607 = vperm.xlu2 %835, %v585_v52   ;;  %602 = vperm.xlu1 %834, %v584_v31   ;;  %v525_v17 = vadd.f32 %v524_v21, %v523_v59  ;;  %v588_v19 = vmul.f32 %v578_v35, %v1342_v32  ;;  %vm794_vm11 = vcmask 31744  }
 0x164   :  { %v917_v29 = vpop.eup %916  ;;  %v506_v9 = vrot.slane %v505_v10, 1  ;;  %v1466_v22 = vsel %vm1538_vm2, %v915_v50, 0.0  ;;  %v580_v37 = vmul.f32 %v913_v6, %v572_v48  ;;  %v538_v42 = vrot.slane %v537_v18, 4 }
 0x165   :  { %v1471_v53 = vsel %vm316_vm9, %v917_v29, 0.0  ;;  %v526_v40 = vsel %vm335_vm6, %v1466_v22, 0.0  ;;  %v549_v63 = vmax.f32 %v525_v17, 0.5  ;;  %vm787_vm9 = vcmask 1046534  }
 0x166   :  { %v527_v46 = vsel %vm335_vm6, %v1471_v53, 0.0  ;;  %v507_v5 = vadd.f32 %v506_v9, %v505_v10  ;;  %v919_v45 = vpop.eup %918  ;;  %v593_v55 = vmul.f32 %v580_v37, %v1382_v11  ;;  %v539_v7 = vadd.f32 %v538_v42, %v537_v18 }
 0x167   :  { %v528_v43 = vadd.f32 %v527_v46, %v526_v40  ;;  %v561_v14 = vmul.f32 %v919_v45, %v545_v56  ;;  %v592_v32 = vmul.f32 %v580_v37, %v1377_v62  ;;  %vm781_vm6 = vcmask 1043459  }
 0x168   :  { %v547_v26 = vmax.f32 %v507_v5, 0.5  ;;  %647 = vperm.xlu0 %836, %v593_v55   ;;  %v540_v13 = vrot.slane %v539_v7, 2 }
 0x169   :  { %v529_v41 = vrot.slane %v528_v43, 4  ;;  %v569_v6 = vsub.f32 2.0, %v561_v14 }
 0x16a   :  { %920 = vrcp.f32 %v547_v26  ;;  %v541_v59 = vadd.f32 %v540_v13, %v539_v7 }
 0x16b   :  { %627 = vperm.xlu2 %835, %v589_v58   ;;  %622 = vperm.xlu1 %834, %v588_v19   ;;  %v530_v60 = vadd.f32 %v529_v41, %v528_v43  ;;  %v577_v47 = vmul.f32 %v919_v45, %v569_v6  ;;  %922 = vrcp.f32 %v549_v63 }
 0x16c   :  { %v542_v2 = vrot.slane %v541_v59, 1 }
 0x16d   :  { %v531_v11 = vrot.slane %v530_v60, 2  ;;  %v587_v56 = vmul.f32 %v577_v47, %v1420_v27 }
 0x16e   :  { %v543_v52 = vadd.f32 %v542_v2, %v541_v59 }
 0x16f   :  { %v532_v20 = vadd.f32 %v531_v11, %v530_v60 }
 0x170   :  { %v921_v1 = vpop.eup %920  ;;  %v551_v10 = vmax.f32 %v543_v52, 0.5 }
 0x171   :  { %v563_v31 = vmul.f32 %v921_v1, %v547_v26  ;;  %v533_v39 = vrot.slane %v532_v20, 1  ;;  %v923_v21 = vpop.eup %922  ;;  %v586_v26 = vmul.f32 %v577_v47, %v1415_v4 }
 0x172   :  { %924 = vrcp.f32 %v551_v10  ;;  %v565_v29 = vmul.f32 %v923_v21, %v549_v63 }
 0x173   :  { %617 = vperm.xlu2 %835, %v587_v56   ;;  %642 = vperm.xlu1 %834, %v592_v32   ;;  %v571_v54 = vsub.f32 2.0, %v563_v31  ;;  %v534_v50 = vadd.f32 %v533_v39, %v532_v20 }
 0x174   :  { %v573_v35 = vsub.f32 2.0, %v565_v29 }
 0x175   :  { %v579_v48 = vmul.f32 %v921_v1, %v571_v54  ;;  %v550_v18 = vmax.f32 %v534_v50, 0.5 }
 0x176   :  { %v581_v37 = vmul.f32 %v923_v21, %v573_v35 }
 0x177   :  { %v591_v9 = vmul.f32 %v579_v48, %v1439_v49  ;;  %v590_v27 = vmul.f32 %v579_v48, %v1434_v33  ;;  %926 = vrcp.f32 %v550_v18 }
 0x178   :  { %v925_v17 = vpop.eup %924  ;;  %v594_v5 = vmul.f32 %v581_v37, %v1401_v3  ;;  %v595_v45 = vmul.f32 %v581_v37, %v1406_v15 }
 0x179   :  { %v567_v40 = vmul.f32 %v925_v17, %v551_v10 }
 0x17b   :  { %637 = vperm.xlu2 %835, %v591_v9   ;;  %632 = vperm.xlu1 %834, %v590_v27   ;;  %v575_v55 = vsub.f32 2.0, %v567_v40 }
 0x17d   :  { %v927_v62 = vpop.eup %926  ;;  %v583_v49 = vmul.f32 %v925_v17, %v575_v55 }
 0x17e   :  { %v566_v42 = vmul.f32 %v927_v62, %v550_v18 }
 0x17f   :  { %v598_v14 = vmul.f32 %v583_v49, %v1455_v30  ;;  %v599_v3 = vmul.f32 %v583_v49, %v1450_v16 }
 0x180   :  { %v574_v46 = vsub.f32 2.0, %v566_v42 }
 0x182   :  { %v582_v43 = vmul.f32 %v927_v62, %v574_v46 }
 0x183   :  { %652 = vperm.xlu2 %835, %v594_v5   ;;  %657 = vperm.xlu1 %834, %v595_v45  }
 0x184   :  { %v596_v33 = vmul.f32 %v582_v43, %v1466_v22  ;;  %v597_v7 = vmul.f32 %v582_v43, %v1471_v53 }
 0x186   :  { %662 = vperm.xlu0 %836, %v596_v33  }
 0x18b   :  { %667 = vperm.xlu2 %835, %v597_v7   ;;  %672 = vperm.xlu1 %834, %v598_v14  }
 0x18e   :  { %612 = vperm.xlu0 %836, %v586_v26  }
 0x196   :  { %677 = vperm.xlu0 %836, %v599_v3  }
 0x1bd   :  { %v608_v15 = vpop.permute.xlu2 %607 }
 0x1be   :  { %v681_v59 = vmul.f32 %v608_v15, %v1059_v38 }
 0x1c0   :  { %v698_v56 = vsel %vm696_vm3, %v681_v59, 0.0 }
 0x1c5   :  { %v628_v63 = vpop.permute.xlu2 %627 }
 0x1c6   :  { %v685_v11 = vmul.f32 %v628_v63, %v1055_v36 }
 0x1c8   :  { %v716_v36 = vsel %vm696_vm3, %v685_v11, 0.0 }
 0x1cd   :  { %v618_v19 = vpop.permute.xlu2 %617 }
 0x1ce   :  { %v683_v37 = vmul.f32 %v618_v19, %v1084_v61 }
 0x1d0   :  { %v707_v43 = vsel %vm696_vm3, %v683_v37, 0.0 }
 0x1d5   :  { %v603_v58 = vpop.permute.xlu1 %602  ;;  %v638_v22 = vpop.permute.xlu2 %637 }
 0x1d6   :  { %v680_v53 = vmul.f32 %v603_v58, %v1034_v23  ;;  %v687_v20 = vmul.f32 %v638_v22, %v1105_v12  ;;  %v1539_v22 = vld [vmem:[#allocation6_spill] sm:$0xff] }
 0x1d8   :  { %v697_v16 = vsel %vm696_vm3, %v680_v53, 0.0  ;;  %v725_v12 = vsel %vm696_vm3, %v687_v20, 0.0 }
 0x1d9   :  { %v699_v23 = vadd.f32 %v698_v56, %v697_v16 }
 0x1da   :  { %v648_v30 = vpop.permute.xlu0 %647 }
 0x1db   :  { %v689_v38 = vmul.f32 %v648_v30, %v1074_v51  ;;  %v700_v51 = vrot.slane %v699_v23, 4  ;;  %v1540_v30 = vld [vmem:[#allocation7_spill] sm:$0xff] }
 0x1dd   :  { %v623_v41 = vpop.permute.xlu1 %622  ;;  %v653_v6 = vpop.permute.xlu2 %652  ;;  %v701_v35 = vadd.f32 %v700_v51, %v699_v23 }
 0x1de   :  { %v684_v4 = vmul.f32 %v623_v41, %v1037_v25  ;;  %v690_v32 = vmul.f32 %v653_v6, %v1080_v57 }
 0x1df   :  { %v702_v45 = vrot.slane %v701_v35, 2 }
 0x1e0   :  { %v715_v1 = vsel %vm696_vm3, %v684_v4, 0.0  ;;  %v742_v48 = vsel %vm696_vm3, %v690_v32, 0.0 }
 0x1e1   :  { %v717_v10 = vadd.f32 %v716_v36, %v715_v1  ;;  %v703_v61 = vadd.f32 %v702_v45, %v701_v35 }
 0x1e3   :  { %v718_v27 = vrot.slane %v717_v10, 4  ;;  %v704_v4 = vrot.slane %v703_v61, 1 }
 0x1e5   :  { %v643_v13 = vpop.permute.xlu1 %642  ;;  %v668_v31 = vpop.permute.xlu2 %667  ;;  %v719_v5 = vadd.f32 %v718_v27, %v717_v10 }
 0x1e6   :  { %v688_v2 = vmul.f32 %v643_v13, %v1047_v28  ;;  %v693_v57 = vmul.f32 %v668_v31, %v1119_v24 }
 0x1e7   :  { %v720_v15 = vrot.slane %v719_v5, 2 }
 0x1e8   :  { %v733_v28 = vsel %vm696_vm3, %v688_v2, 0.0  ;;  %v752_v17 = vsel %vm696_vm3, %v693_v57, 0.0 }
 0x1e9   :  { %v721_v53 = vadd.f32 %v720_v15, %v719_v5 }
 0x1ed   :  { %v633_v60 = vpop.permute.xlu1 %632 }
 0x1ee   :  { %v686_v47 = vmul.f32 %v633_v60, %v1089_v0 }
 0x1f0   :  { %v724_v0 = vsel %vm696_vm3, %v686_v47, 0.0 }
 0x1f1   :  { %v726_v50 = vadd.f32 %v725_v12, %v724_v0  ;;  %v705_v0 = vadd.f32 %v704_v4, %v703_v61 }
 0x1f3   :  { %v727_v62 = vrot.slane %v726_v50, 4 }
 0x1f5   :  { %v658_v52 = vpop.permute.xlu1 %657  ;;  %v728_v55 = vadd.f32 %v727_v62, %v726_v50 }
 0x1f6   :  { %v691_v25 = vmul.f32 %v658_v52, %v1097_v8  ;;  %v734_v8 = vsel %vm696_vm3, %v689_v38, 0.0  ;;  %v722_v38 = vrot.slane %v721_v53, 1 }
 0x1f7   :  { %v735_v18 = vadd.f32 %v734_v8, %v733_v28  ;;  %v729_v63 = vrot.slane %v728_v55, 2 }
 0x1f8   :  { %v663_v39 = vpop.permute.xlu0 %662  ;;  %v743_v21 = vsel %vm696_vm3, %v691_v25, 0.0 }
 0x1f9   :  { %v692_v54 = vmul.f32 %v663_v39, %v1051_v34  ;;  %v744_v29 = vadd.f32 %v743_v21, %v742_v48  ;;  %v736_v34 = vrot.slane %v735_v18, 4  ;;  %v730_v16 = vadd.f32 %v729_v63, %v728_v55 }
 0x1fa   :  { %v723_v21 = vadd.f32 %v722_v38, %v721_v53 }
 0x1fb   :  { %v751_v9 = vsel %vm696_vm3, %v692_v54, 0.0  ;;  %v745_v42 = vrot.slane %v744_v29, 4  ;;  %v737_v33 = vadd.f32 %v736_v34, %v735_v18  ;;  %v731_v25 = vrot.slane %v730_v16, 1 }
 0x1fc   :  { %v753_v40 = vadd.f32 %v752_v17, %v751_v9 }
 0x1fd   :  { %v746_v14 = vadd.f32 %v745_v42, %v744_v29  ;;  %v673_v26 = vpop.permute.xlu1 %672  ;;  %v738_v19 = vrot.slane %v737_v33, 2  ;;  %v732_v54 = vadd.f32 %v731_v25, %v730_v16 }
 0x1fe   :  { %v754_v49 = vrot.slane %v753_v40, 4  ;;  %v694_v13 = vmul.f32 %v673_v26, %v1539_v22 }
 0x1ff   :  { %v739_v11 = vadd.f32 %v738_v19, %v737_v33 }
 0x200   :  { %v613_v46 = vpop.permute.xlu0 %612  ;;  %v755_v41 = vadd.f32 %v754_v49, %v753_v40  ;;  %v760_v56 = vsel %vm696_vm3, %v694_v13, 0.0 }
 0x201   :  { %v682_v24 = vmul.f32 %v613_v46, %v1067_v44  ;;  %v747_v44 = vrot.slane %v746_v14, 2  ;;  %v740_v36 = vrot.slane %v739_v11, 1 }
 0x202   :  { %v756_v2 = vrot.slane %v755_v41, 2 }
 0x203   :  { %v706_v7 = vsel %vm696_vm3, %v682_v24, 0.0  ;;  %v748_v52 = vadd.f32 %v747_v44, %v746_v14  ;;  %v741_v57 = vadd.f32 %v740_v36, %v739_v11 }
 0x204   :  { %v708_v3 = vadd.f32 %v707_v43, %v706_v7  ;;  %v757_v28 = vadd.f32 %v756_v2, %v755_v41 }
 0x205   :  { %v749_v39 = vrot.slane %v748_v52, 1 }
 0x206   :  { %v709_v58 = vrot.slane %v708_v3, 4  ;;  %v758_v50 = vrot.slane %v757_v28, 1 }
 0x207   :  { %v750_v18 = vadd.f32 %v749_v39, %v748_v52 }
 0x208   :  { %v710_v6 = vadd.f32 %v709_v58, %v708_v3  ;;  %v678_v60 = vpop.permute.xlu0 %677  ;;  %v759_v62 = vadd.f32 %v758_v50, %v757_v28 }
 0x209   :  { %v695_v59 = vmul.f32 %v678_v60, %v1540_v30 }
 0x20a   :  { %v711_v47 = vrot.slane %v710_v6, 2 }
 0x20b   :  { %v761_v20 = vsel %vm696_vm3, %v695_v59, 0.0 }
 0x20c   :  { %v712_v23 = vadd.f32 %v711_v47, %v710_v6  ;;  %v762_v1 = vadd.f32 %v761_v20, %v760_v56 }
 0x20e   :  { %v713_v32 = vrot.slane %v712_v23, 1  ;;  %v763_v31 = vrot.slane %v762_v1, 4 }
 0x210   :  { %v714_v12 = vadd.f32 %v713_v32, %v712_v23  ;;  %v764_v10 = vadd.f32 %v763_v31, %v762_v1 }
 0x212   :  { %v778_v51 = vsel %vm777_vm4, %v714_v12, %v705_v0  ;;  %v765_v8 = vrot.slane %v764_v10, 2 }
 0x213   :  { %v780_v48 = vsel %vm779_vm5, %v723_v21, %v778_v51 }
 0x214   :  { %v766_v29 = vadd.f32 %v765_v8, %v764_v10  ;;  %v782_v9 = vsel %vm781_vm6, %v732_v54, %v780_v48 }
 0x215   :  { %v784_v27 = vsel %vm783_vm7, %v741_v57, %v782_v9 }
 0x216   :  { %v767_v35 = vrot.slane %v766_v29, 1  ;;  %v786_v17 = vsel %vm785_vm8, %v750_v18, %v784_v27 }
 0x217   :  { %v788_v34 = vsel %vm787_vm9, %v759_v62, %v786_v17 }
 0x218   :  { %v768_v37 = vadd.f32 %v767_v35, %v766_v29 }
 0x21a   :  { %v790_v40 = vsel %vm789_vm10, %v768_v37, %v788_v34 }
 0x21b   :  { %791 = vrot.lane.b32.xlu2 %v790_v40, %s958_s0 }
 0x275   :  { %v792_v42 = vpop.permute.xlu2 %791 }
 0x276   :  { %795 = vst.msk [vmem:[%s1532_s6] sm:$0xff] %vm794_vm11, %v792_v42 }
 0x277   :  { %800 = vsyncpa [#allocation4], 1 }

</bundles_post_ra>
